<compile_context>
chip_gen: v7x
topology: tpu7x:2x2x1
jax: 0.10.0
libtpu: 0.0.40
codegen_flags: <defaults>
</compile_context>

<pallas_src>
import jax
import jax.numpy as jnp
from jax.experimental import pallas as pl
from jax.experimental.pallas import tpu as pltpu


def _round_up(v, m):
    return -(-v // m) * m


# ----------------------------------------------------------------------------
# Kernel
# ----------------------------------------------------------------------------
def _l2l_kernel(xT_ref, wmat_ref, b1_ref, outT_ref):
    """One batch tile: xT [n_dim, TB] -> outT [n_dim+1, TB].

    wmat packs (row-blocks at 16-row aligned offsets, all with `ha` columns):
      rows [0        : ha]        fc1 weight (cols 0:n_dim used)
      rows [stride   : stride+ha] fc2 weight, with fc2 bias in column `hidden`
                                  and a 1.0 at [hidden, hidden] (ones-row pass-through)
      rows [2*stride : +n_dim+1]  fused [fc_w ; fc_b], with their biases in column `hidden`
    b1 is the fc1 bias padded to [ha, 1] with a 1.0 at row `hidden`, so
    h1[hidden, :] == 1 and the later biases ride the matmuls for free.
    """
    n_dim = xT_ref.shape[0]
    ha = wmat_ref.shape[1]
    stride = _round_up(ha, 16)
    mm = wmat_ref.dtype                                   # matmul operand dtype

    x = xT_ref[...].astype(mm)                            # [n_dim, TB]

    # fc1 (+bias) + ReLU: MXU contraction (zero-padded K) + single VPU pass.
    z1 = jnp.dot(wmat_ref[0:ha, 0:n_dim], x,
                 preferred_element_type=jnp.float32) + b1_ref[...]
    h1 = jnp.maximum(z1, 0.0)                             # [ha, TB]; row `hidden` == 1

    # fc2 + ReLU: bias folded into the matmul via h1's ones row.
    h2 = jnp.maximum(
        jnp.dot(wmat_ref[stride:stride + ha, :], h1.astype(mm),
                preferred_element_type=jnp.float32), 0.0)  # [ha, TB]; ones row preserved

    # Fused heads [fc_w ; fc_b]: biases folded via h2's ones row; lane-dense store.
    outT_ref[...] = jnp.dot(
        wmat_ref[2 * stride:2 * stride + n_dim + 1, :], h2.astype(mm),
        preferred_element_type=jnp.float32).astype(outT_ref.dtype)


# ----------------------------------------------------------------------------
# Parameter packing (biases folded, heads fused, two operands total)
# ----------------------------------------------------------------------------
def pack_params(params, matmul_dtype=jnp.bfloat16):
    w1, b1 = params["w1"], params["b1"]        # [H, n_dim], [H, 1]
    w2, b2 = params["w2"], params["b2"]        # [H, H],     [H, 1]
    ww, bw = params["ww"], params["bw"]        # [n_dim, H], [n_dim, 1]
    wb, bb = params["wb"], params["bb"]        # [1, H],     [1, 1]
    hidden, n_dim = w1.shape
    ha = _round_up(hidden + 1, 8)              # hidden + ones-row, sublane aligned
    stride = _round_up(ha, 16)                 # 16-row aligned block starts (bf16 safe)
    f32 = jnp.float32

    # fc1 block [ha, ha]: only columns 0:n_dim are used.
    w1a = jnp.zeros((ha, ha), f32).at[:hidden, :n_dim].set(w1.astype(f32))

    # fc1 bias (kept f32): row `hidden` = 1.0 -> relu(z1)[hidden] == 1 (ones row).
    b1a = (jnp.zeros((ha, 1), f32)
           .at[:hidden].set(b1.astype(f32))
           .at[hidden, 0].set(1.0))

    # fc2 block: w2 + (b2 in column `hidden`); [hidden, hidden] = 1 keeps the ones row.
    w2a = (jnp.zeros((ha, ha), f32)
           .at[:hidden, :hidden].set(w2.astype(f32))
           .at[:hidden, hidden].set(b2[:, 0].astype(f32))
           .at[hidden, hidden].set(1.0))

    # Fused heads [n_dim+1, ha]: rows 0:n_dim = fc_w, row n_dim = fc_b; biases in col `hidden`.
    wha = (jnp.zeros((n_dim + 1, ha), f32)
           .at[:n_dim, :hidden].set(ww.astype(f32))
           .at[n_dim, :hidden].set(wb[0].astype(f32))
           .at[:n_dim, hidden].set(bw[:, 0].astype(f32))
           .at[n_dim, hidden].set(bb[0, 0].astype(f32)))

    wmat = (jnp.zeros((2 * stride + n_dim + 1, ha), f32)
            .at[0:ha, :].set(w1a)
            .at[stride:stride + ha, :].set(w2a)
            .at[2 * stride:, :].set(wha)
            .astype(matmul_dtype))

    return {"wmat": wmat, "b1": b1a, "n_dim": n_dim, "hidden": hidden, "ha": ha}


# ----------------------------------------------------------------------------
# Tiling / VMEM heuristics
# ----------------------------------------------------------------------------
def _choose_batch_tile(B, tb):
    """Lane-aligned batch tile; >=2 grid steps for non-tiny batches (megacore)."""
    tb = max(128, (tb // 128) * 128)
    if B <= 256:
        return B                                   # single full-extent block
    half = _round_up(-(-B // 2), 128)              # ensure >=2 grid steps
    return min(tb, half)


def _vmem_limit_bytes(TB, ha, n_dim, mm_itemsize):
    # Double-buffered f32 I/O tiles (sublane-padded) + live f32/bf16 intermediates.
    io = 2 * 4 * TB * (_round_up(n_dim, 8) + _round_up(n_dim + 1, 8))
    inter = TB * ha * (3 * 4 + 2 * mm_itemsize)
    est = io + inter + (2 << 20)
    # NOTE: capped at 64 MiB (v7x physical VMEM). For tb >= 64K on v5e/v6e raise the cap,
    # or (v7x) add an inner lane-chunk loop to keep h1/h2 small while the HBM tile stays big.
    return int(min(64 << 20, max(32 << 20, (est * 3) // 2)))


# ----------------------------------------------------------------------------
# Forward wrappers
# ----------------------------------------------------------------------------
def l2l_forward_t(xT, packed, *, tb=32768, interpret=False):
    """Batch-on-lanes entry point (preferred for performance).

    xT: [n_dim, B] float32.  Returns outT [n_dim+1, B] float32 where rows
    0..n_dim-1 are w^T and row n_dim is b^T.
    """
    n_dim, B = xT.shape
    ha = packed["ha"]
    wmat, b1 = packed["wmat"], packed["b1"]

    TB = _choose_batch_tile(B, tb)
    grid = (pl.cdiv(B, TB),)                       # ragged tail handled by Pallas
                                                   # partial-block read/write masking
    in_specs = [
        pl.BlockSpec((n_dim, TB), lambda i: (0, i)),     # batch tile (lanes)
        pl.BlockSpec(wmat.shape, lambda i: (0, 0)),      # VMEM-resident packed weights
        pl.BlockSpec(b1.shape, lambda i: (0, 0)),        # VMEM-resident fc1 bias (f32)
    ]
    out_specs = pl.BlockSpec((n_dim + 1, TB), lambda i: (0, i))
    out_shape = jax.ShapeDtypeStruct((n_dim + 1, B), jnp.float32)

    return pl.pallas_call(
        _l2l_kernel,
        out_shape=out_shape,
        grid=grid,
        in_specs=in_specs,
        out_specs=out_specs,
        compiler_params=pltpu.CompilerParams(
            dimension_semantics=("parallel",),           # megacore sharding on v7x
            vmem_limit_bytes=_vmem_limit_bytes(TB, ha, n_dim, wmat.dtype.itemsize),
        ),
        interpret=interpret,
    )(xT, wmat, b1)


def l2l_forward(x, params, *, tb=32768, matmul_dtype=jnp.bfloat16, interpret=False):
    """PyTorch-compatible entry: x [B, n_dim] -> (w [B, n_dim], b [B, 1]).

    Note: this wrapper pays two HBM transposes (x.T in, out.T out). Callers that
    can keep batch on the trailing axis should use l2l_forward_t directly.
    """
    B, n_dim = x.shape
    packed = pack_params(params, matmul_dtype=matmul_dtype)
    outT = l2l_forward_t(x.T, packed, tb=tb, interpret=interpret)
    return outT[:n_dim, :].T, outT[n_dim:, :].T


# ----------------------------------------------------------------------------
# Init + pure-JAX reference
# ----------------------------------------------------------------------------
def init_params(key, n_dim=2, hidden=32):
    """nn.Linear-style init (uniform +-1/sqrt(fan_in)), PyTorch [out, in] layout."""
    ks = jax.random.split(key, 8)

    def linear(kw, kb, fan_in, fan_out):
        bound = 1.0 / jnp.sqrt(jnp.float32(fan_in))
        w = jax.random.uniform(kw, (fan_out, fan_in), jnp.float32, -bound, bound)
        b = jax.random.uniform(kb, (fan_out, 1), jnp.float32, -bound, bound)
        return w, b

    w1, b1 = linear(ks[0], ks[1], n_dim, hidden)   # fc1
    w2, b2 = linear(ks[2], ks[3], hidden, hidden)  # fc2
    ww, bw = linear(ks[4], ks[5], hidden, n_dim)   # fc_w
    wb, bb = linear(ks[6], ks[7], hidden, 1)       # fc_b
    return dict(w1=w1, b1=b1, w2=w2, b2=b2, ww=ww, bw=bw, wb=wb, bb=bb)


def l2l_reference(x, p):
    h1 = jnp.maximum(x @ p["w1"].T + p["b1"].T, 0.0)
    h2 = jnp.maximum(h1 @ p["w2"].T + p["b2"].T, 0.0)
    return h2 @ p["ww"].T + p["bw"].T, h2 @ p["wb"].T + p["bb"].T


# ----------------------------------------------------------------------------
# Self-test
# ----------------------------------------------------------------------------
if __name__ == "__main__":
    key = jax.random.PRNGKey(0)
    k_param, k_x1, k_x2 = jax.random.split(key, 3)

    n_dim, hidden = 2, 32
    params = init_params(k_param, n_dim=n_dim, hidden=hidden)

    # --- small batch (single grid step), exact-f32 matmul path --------------
    B = 8
    x = jax.random.normal(k_x1, (B, n_dim), jnp.float32)
    w_out, b_out = l2l_forward(x, params, matmul_dtype=jnp.float32)
    jax.block_until_ready((w_out, b_out))

    w_ref, b_ref = l2l_reference(x, params)
    assert w_out.shape == (B, n_dim) and b_out.shape == (B, 1)
    assert jnp.allclose(w_out, w_ref, atol=2e-4, rtol=2e-4)
    assert jnp.allclose(b_out, b_ref, atol=2e-4, rtol=2e-4)

    # --- larger ragged batch: exercises lane tiling, the >=2-step "parallel"
    #     grid, Pallas partial-block masking of the tail, and both matmul paths.
    B2 = 1736                      # tile heuristic -> TB=896, grid=(2,), ragged tail of 840
    x2 = jax.random.normal(k_x2, (B2, n_dim), jnp.float32)
    w2_ref, b2_ref = l2l_reference(x2, params)

    # f32 matmul operands: tight tolerance.
    w2f, b2f = l2l_forward(x2, params, matmul_dtype=jnp.float32)
    jax.block_until_ready((w2f, b2f))
    assert w2f.shape == (B2, n_dim) and b2f.shape == (B2, 1)
    assert jnp.allclose(w2f, w2_ref, atol=2e-4, rtol=2e-4)
    assert jnp.allclose(b2f, b2_ref, atol=2e-4, rtol=2e-4)

    # Default bf16 matmul operands (f32 accumulation): relaxed tolerance.
    w2b, b2b = l2l_forward(x2, params)
    jax.block_until_ready((w2b, b2b))
    assert jnp.allclose(w2b, w2_ref, atol=5e-2, rtol=5e-2)
    assert jnp.allclose(b2b, b2_ref, atol=5e-2, rtol=5e-2)

    print("KERNEL_OK")
</pallas_src>

<mosaic_0001>
module attributes {stable_mosaic.version = 11 : i64} {
  func.func @_l2l_kernel(%arg0: i32, %arg1: memref<2x8xf32, #tpu.memory_space<vmem>>, %arg2: memref<99x40xf32, #tpu.memory_space<vmem>>, %arg3: memref<40x1xf32, #tpu.memory_space<vmem>>, %arg4: memref<3x8xf32, #tpu.memory_space<vmem>>) attributes {dimension_semantics = [#tpu.dimension_semantics<parallel>], iteration_bounds = array<i64: 1>, scalar_prefetch = 0 : i64, scratch_operands = 0 : i64, tpu.core_type = #tpu.core_type<tc>, window_params = [{transform_indices = @transform_0, window_bounds = array<i64: 2, 8>}, {pipeline_mode = #tpu.pipeline_mode<synchronous>, transform_indices = @transform_1, window_bounds = array<i64: 99, 40>}, {pipeline_mode = #tpu.pipeline_mode<synchronous>, transform_indices = @transform_2, window_bounds = array<i64: 40, 1>}, {transform_indices = @transform_3, window_bounds = array<i64: 3, 8>}]} {
    %c0 = arith.constant 0 : index
    %c0_0 = arith.constant 0 : index
    %0 = vector.load %arg1[%c0, %c0_0] : memref<2x8xf32, #tpu.memory_space<vmem>>, vector<2x8xf32>
    %c0_1 = arith.constant 0 : index
    %c0_2 = arith.constant 0 : index
    %1 = vector.load %arg2[%c0_1, %c0_2] : memref<99x40xf32, #tpu.memory_space<vmem>>, vector<40x2xf32>
    %cst = arith.constant dense<0.000000e+00> : vector<40x8xf32>
    %2 = tpu.matmul %1, %0, %cst {dimension_numbers = #tpu.dot_dimension_numbers<[1], [0], [0], [1], [0, 0, 1, 1], [], []>} : vector<40x2xf32>, vector<2x8xf32>, vector<40x8xf32> -> vector<40x8xf32>
    %c0_3 = arith.constant 0 : index
    %c0_4 = arith.constant 0 : index
    %3 = vector.load %arg3[%c0_3, %c0_4] : memref<40x1xf32, #tpu.memory_space<vmem>>, vector<40x1xf32>
    %4 = vector.broadcast %3 : vector<40x1xf32> to vector<40x8xf32>
    %5 = arith.addf %2, %4 : vector<40x8xf32>
    %cst_5 = arith.constant 0.000000e+00 : f32
    %6 = vector.broadcast %cst_5 : f32 to vector<40x8xf32>
    %7 = arith.maximumf %5, %6 : vector<40x8xf32>
    %c48 = arith.constant 48 : index
    %c0_6 = arith.constant 0 : index
    %8 = vector.load %arg2[%c48, %c0_6] : memref<99x40xf32, #tpu.memory_space<vmem>>, vector<40x40xf32>
    %cst_7 = arith.constant dense<0.000000e+00> : vector<40x8xf32>
    %9 = tpu.matmul %8, %7, %cst_7 {dimension_numbers = #tpu.dot_dimension_numbers<[1], [0], [0], [1], [0, 0, 1, 1], [], []>} : vector<40x40xf32>, vector<40x8xf32>, vector<40x8xf32> -> vector<40x8xf32>
    %cst_8 = arith.constant 0.000000e+00 : f32
    %10 = vector.broadcast %cst_8 : f32 to vector<40x8xf32>
    %11 = arith.maximumf %9, %10 : vector<40x8xf32>
    %c96 = arith.constant 96 : index
    %c0_9 = arith.constant 0 : index
    %12 = vector.load %arg2[%c96, %c0_9] : memref<99x40xf32, #tpu.memory_space<vmem>>, vector<3x40xf32>
    %cst_10 = arith.constant dense<0.000000e+00> : vector<3x8xf32>
    %13 = tpu.matmul %12, %11, %cst_10 {dimension_numbers = #tpu.dot_dimension_numbers<[1], [0], [0], [1], [0, 0, 1, 1], [], []>} : vector<3x40xf32>, vector<40x8xf32>, vector<3x8xf32> -> vector<3x8xf32>
    %c0_11 = arith.constant 0 : index
    %c0_12 = arith.constant 0 : index
    %14 = vector.load %arg4[%c0_11, %c0_12] : memref<3x8xf32, #tpu.memory_space<vmem>>, vector<3x8xf32>
    tpu.vector_store %arg4[%c0_11, %c0_12], %13 {strides = array<i32>} : memref<3x8xf32, #tpu.memory_space<vmem>>, vector<3x8xf32>,
    return
  }
  func.func @transform_0(%arg0: i32) -> (i32, i32) {
    %c0_i32 = arith.constant 0 : i32
    %c0_i32_0 = arith.constant 0 : i32
    return %c0_i32, %arg0 : i32, i32
  }
  func.func @transform_1(%arg0: i32) -> (i32, i32) {
    %c0_i32 = arith.constant 0 : i32
    %c0_i32_0 = arith.constant 0 : i32
    %c0_i32_1 = arith.constant 0 : i32
    return %c0_i32, %c0_i32_0 : i32, i32
  }
  func.func @transform_2(%arg0: i32) -> (i32, i32) {
    %c0_i32 = arith.constant 0 : i32
    %c0_i32_0 = arith.constant 0 : i32
    %c0_i32_1 = arith.constant 0 : i32
    return %c0_i32, %c0_i32_0 : i32, i32
  }
  func.func @transform_3(%arg0: i32) -> (i32, i32) {
    %c0_i32 = arith.constant 0 : i32
    %c0_i32_0 = arith.constant 0 : i32
    return %c0_i32, %arg0 : i32, i32
  }
}

</mosaic_0001>

<bundles_post_ra>
// kernel: tpu_custom_call.1
= control target key start
LH: loop header
LB: loop body
LE: loop exit
PB: predicated region body
PF: predicated region fallthrough
CT: control target
= control target key end

     0   :  { %vm67_vm0 = vcmask 1041408   ;;  %v504_v2 = vmov 0.0   ;;  %vm505_vm1 = vmmov 0   ;;  %vm51_vm2 = vcmask 15360   ;;  %s628_s0 = inlined_call_operand.vmem [shape: f32[2,8], index: 0, kind: input, shape index: {}]   ;;  %s629_s1 = inlined_call_operand.vmem [shape: f32[99,40], index: 1, kind: input, shape index: {}]   ;;  %s630_s2 = inlined_call_operand.vmem [shape: f32[40,1], index: 2, kind: input, shape index: {}]   ;;  %s631_s3 = inlined_call_operand.hbm [shape: f32[3,8], index: 3, kind: output, shape index: {}]  }
   0x1   :  { %v15_v0 = vld [vmem:[%s628_s0] sm:$0x3]  ;;  %406 = vmatprep.subr.mxu0 %v504_v2  ;;  %408 = vmatprep.mubr.msk.f32.mxu0 %vm505_vm1, %v504_v2  ;;  %v506_v3 = vmov 0   ;;  %v23_v5 = vld [vmem:[%s630_s2 + $0x10] sm:$0xff]  ;;  %v17_v6 = vld [vmem:[%s629_s1 + $0x8] sm:$0xff] }
   0x2   :  { %v16_v1 = vld [vmem:[%s629_s1] sm:$0xff]  ;;  %407 = vmatpush3.msk.msra.mxu0 %vm67_vm0, %v15_v0  ;;  %478 = vset.pattern.permute.xlu0 %v506_v3  ;;  %v22_v7 = vld [vmem:[%s630_s2 + $0x8] sm:$0xff] }
   0x3   :  { %v21_v4 = vld [vmem:[%s630_s2] sm:$0xff]  ;;  %409 = vmatmul.mubr.msk.f32.vlgmr.msra.gmra.mrb[0].mxu0 %vm51_vm2, %v16_v1  ;;  %479 = vset.pattern.permute.xlu1 %v506_v3 }
   0x4   :  { %28 = vperm.xlu0 %478, %v21_v4   ;;  %411 = vmatprep.mubr.msk.f32.mxu0 %vm505_vm1, %v504_v2 }
   0x5   :  { %8 = vsyncpa [#allocation3], 0  ;;  %38 = vperm.xlu1 %479, %v23_v5   ;;  %433 = vmatprep.mubr.msk.f32.mxu1 %vm505_vm1, %v504_v2  ;;  %v24_v8 = vld [vmem:[%s630_s2 + $0x18] sm:$0xff]  ;;  %v18_v9 = vld [vmem:[%s629_s1 + $0x10] sm:$0xff]  ;;  %v507_v13 = vmov 0.0|0.0   ;;  %vm171_vm3 = vcmask 326656  }
   0x6   :  { %v25_v10 = vld [vmem:[%s630_s2 + $0x20] sm:$0xff]  ;;  %v19_v11 = vld [vmem:[%s629_s1 + $0x18] sm:$0xff]  ;;  %461 = vmatprep.subr.bf16.mxu1 %v507_v13  ;;  %467 = vmatprep.subr.bf16.mxu0 %v507_v13  ;;  %v166_v41 = vld [vmem:[%s629_s1 + $0x30] sm:$0xff]  ;;  %s508_s17 = smov [#allocation2]   ;;  %vm356_vm4 = vcmask 59392  }
   0x7   :  { %412 = vmatmul.mubr.msk.f32.gmra.mrb[2].mxu0 %vm51_vm2, %v17_v6  ;;  %v20_v12 = vld [vmem:[%s629_s1 + $0x20] sm:$0xff]  ;;  %v167_v42 = vld [vmem:[%s629_s1 + $0x38] sm:$0xff]  ;;  %v169_v44 = vld [vmem:[%s629_s1 + $0x48] sm:$0xff]  ;;  %s364_s0 = sshll.u32 %s508_s17, 4  ;;  %s365_s0 = int_to_ptr.vmem [resolvable:$true] %s364_s0 }
   0x8   :  { %33 = vperm.xlu0 %478, %v22_v7   ;;  %414 = vmatprep.mubr.msk.f32.mxu0 %vm505_vm1, %v504_v2  ;;  %v168_v43 = vld [vmem:[%s629_s1 + $0x40] sm:$0xff]  ;;  %v170_v45 = vld [vmem:[%s629_s1 + $0x50] sm:$0xff]  ;;  %s480_s18 = scalar_lea.vmem %s365_s0, 64  ;;  %p485_p1 = scmp.lt.s32.totalorder %s365_s0, %s365_s0 }
   0x9   :  { %43 = vperm.xlu1 %479, %v24_v8   ;;  %v282_v63 = vld [vmem:[%s629_s1 + $0x60] sm:$0x7]  ;;  %p481_p0 = scmp.ne.s32.totalorder %s365_s0, %s480_s18  ;;  %p486_p2 = scmp.lt.s32.totalorder %s480_s18, %s480_s18 }
   0xb   :  { %415 = vmatmul.mubr.msk.f32.gmra.mrb[4].mxu0 %vm51_vm2, %v18_v9  ;;  %p487_p3 = por %p486_p2, %p485_p1 }
   0xc   :  { %48 = vperm.xlu0 %478, %v25_v10   ;;  %417 = vmatprep.mubr.msk.f32.mxu0 %vm505_vm1, %v504_v2 }
   0xd   :  { %p488_p4 = pnand %p487_p3, %p481_p0 }
   0xf   :  { %418 = vmatmul.mubr.msk.f32.gmra.mrb[6].mxu0 %vm51_vm2, %v19_v11 }
  0x10   :  { %420 = vmatprep.mubr.msk.f32.mxu0 %vm505_vm1, %v504_v2 }
  0x13   :  { %421 = vmatmul.mubr.msk.f32.gmra.mrb[8].mxu0 %vm51_vm2, %v20_v12 }
  0x14   :  { %458 = vmatprep.mubr.msk.f32.mxu0 %vm505_vm1, %v504_v2 }
  0x83   :  { %v29_v14 = vpop.permute.xlu0 %28 }
  0x84   :  { %v39_v22 = vpop.permute.xlu1 %38 }
  0x87   :  { %v34_v18 = vpop.permute.xlu0 %33 }
  0x88   :  { %v44_v29 = vpop.permute.xlu1 %43 }
  0x8b   :  { %v49_v35 = vpop.permute.xlu0 %48 }
  0xd6   :  { %v137_v15 = vpop.f32.mrb[0].mxu0 }
  0xd7   :  { %v410_v16 = vpop.f32.mrb[1].mxu0  ;;  %v138_v17 = vadd.f32 %v137_v15, %v29_v14 }
  0xd9   :  { %v161_v23 = vmax.f32 %v138_v17, 0.0 }
  0xda   :  { %v142_v19 = vpop.f32.mrb[2].mxu0 }
  0xdb   :  { %v143_v20 = vadd.f32 %v142_v19, %v34_v18  ;;  %v413_v21 = vpop.f32.mrb[3].mxu0 }
  0xdd   :  { %v162_v24 = vmax.f32 %v143_v20, 0.0 }
  0xde   :  { %v147_v25 = vpop.f32.mrb[4].mxu0 }
  0xdf   :  { %v416_v26 = vpop.f32.mrb[5].mxu0  ;;  %v462_v27 = vpack.c.bf16 %v162_v24, %v161_v23  ;;  %v148_v28 = vadd.f32 %v147_v25, %v39_v22 }
  0xe1   :  { %463 = vmatpush3.bf16.msra.mxu1 %v462_v27  ;;  %v163_v33 = vmax.f32 %v148_v28, 0.0 }
  0xe2   :  { %v152_v30 = vpop.f32.mrb[6].mxu0  ;;  %464 = vmatprep.subr.bf16.mxu1 %v507_v13 }
  0xe3   :  { %v153_v31 = vadd.f32 %v152_v30, %v44_v29  ;;  %v419_v32 = vpop.f32.mrb[7].mxu0 }
  0xe5   :  { %v164_v34 = vmax.f32 %v153_v31, 0.0 }
  0xe6   :  { %v157_v36 = vpop.f32.mrb[8].mxu0 }
  0xe7   :  { %v465_v37 = vpack.c.bf16 %v164_v34, %v163_v33  ;;  %v158_v38 = vadd.f32 %v157_v36, %v49_v35  ;;  %v422_v39 = vpop.f32.mrb[9].mxu0 }
  0xe9   :  { %466 = vmatpush3.bf16.msra.mxu1 %v465_v37  ;;  %v165_v40 = vmax.f32 %v158_v38, 0.0 }
  0xea   :  { %431 = vmatprep.subr.mxu1 %v504_v2 }
  0xed   :  { %432 = vmatpush3.msra.mxu1 %v165_v40 }
  0xee   :  { %434 = vmatmul.mubr.msk.f32.vlgmr.msra.gmra.mrb[0].mxu1 %vm171_vm3, %v166_v41 }
  0xef   :  { %436 = vmatprep.mubr.msk.f32.mxu1 %vm505_vm1, %v504_v2 }
  0xf2   :  { %437 = vmatmul.mubr.msk.f32.gmra.mrb[2].mxu1 %vm171_vm3, %v167_v42 }
  0xf3   :  { %439 = vmatprep.mubr.msk.f32.mxu1 %vm505_vm1, %v504_v2 }
  0xf6   :  { %440 = vmatmul.mubr.msk.f32.gmra.mrb[4].mxu1 %vm171_vm3, %v168_v43 }
  0xf7   :  { %442 = vmatprep.mubr.msk.f32.mxu1 %vm505_vm1, %v504_v2 }
  0xfa   :  { %443 = vmatmul.mubr.msk.f32.gmra.mrb[6].mxu1 %vm171_vm3, %v169_v44 }
  0xfb   :  { %445 = vmatprep.mubr.msk.f32.mxu1 %vm505_vm1, %v504_v2 }
  0xfe   :  { %446 = vmatmul.mubr.msk.f32.gmra.mrb[8].mxu1 %vm171_vm3, %v170_v45 }
 0x1c1   :  { %v253_v46 = vpop.f32.mrb[0].mxu1 }
 0x1c2   :  { %v435_v47 = vpop.f32.mrb[1].mxu1  ;;  %v277_v49 = vmax.f32 %v253_v46, 0.0 }
 0x1c5   :  { %v258_v48 = vpop.f32.mrb[2].mxu1 }
 0x1c6   :  { %v278_v50 = vmax.f32 %v258_v48, 0.0  ;;  %v438_v51 = vpop.f32.mrb[3].mxu1 }
 0x1c8   :  { %v468_v52 = vpack.c.bf16 %v278_v50, %v277_v49 }
 0x1c9   :  { %v263_v53 = vpop.f32.mrb[4].mxu1 }
 0x1ca   :  { %v441_v54 = vpop.f32.mrb[5].mxu1  ;;  %469 = vmatpush3.bf16.msra.mxu0 %v468_v52  ;;  %v279_v56 = vmax.f32 %v263_v53, 0.0 }
 0x1cb   :  { %470 = vmatprep.subr.bf16.mxu0 %v507_v13 }
 0x1cd   :  { %v268_v55 = vpop.f32.mrb[6].mxu1 }
 0x1ce   :  { %v280_v57 = vmax.f32 %v268_v55, 0.0  ;;  %v444_v58 = vpop.f32.mrb[7].mxu1 }
 0x1d0   :  { %v471_v59 = vpack.c.bf16 %v280_v57, %v279_v56 }
 0x1d1   :  { %v273_v60 = vpop.f32.mrb[8].mxu1 }
 0x1d2   :  { %472 = vmatpush3.bf16.msra.mxu0 %v471_v59  ;;  %v281_v61 = vmax.f32 %v273_v60, 0.0  ;;  %v447_v62 = vpop.f32.mrb[9].mxu1 }
 0x1d3   :  { %456 = vmatprep.subr.mxu0 %v504_v2 }
 0x1d6   :  { %457 = vmatpush3.msra.mxu0 %v281_v61 }
 0x1d7   :  { %459 = vmatmul.mubr.msk.f32.vlgmr.msra.gmra.mrb[10].mxu0 %vm171_vm3, %v282_v63 }
 0x2aa   :  { %v352_v0 = vpop.f32.mrb[10].mxu0 }
 0x2ab   :  { %357 = vst.msk [vmem:[#allocation2] sm:$0x7] %vm356_vm4, %v352_v0  ;;  %v460_v1 = vpop.f32.mrb[11].mxu0 }
 0x2ac   :  { %491 = shalt.err (!%p488_p4)
}
 0x2ad   :  { %s492_s1 = scalar_lea.hbm %s631_s3, 64 }
 0x2ae   :  { %p493_p5 = scmp.ne.s32.totalorder %s631_s3, %s492_s1  ;;  %p496_p6 = scmp.lt.u32.totalorder %s492_s1, %s631_s3 }
 0x2b0   :  { %p498_p7 = pnand %p496_p6, %p493_p5 }
 0x2b2   :  { %501 = shalt.err (!%p498_p7)
}
 0x2b3   :  { %367 = dma.vmem_to_hbm [thread:$0]  %s365_s0, 64, %s631_s3, [#allocation3]  }
 0x2b4   :  { %502 = dma.done.wait [#allocation3], 64  }
 0x2b5   :  { %503 = vsyncadd [#allocation3], 4294967232 }
 0x2b6   :  { %371 = vsyncpa [#allocation3], 1 }

</bundles_post_ra>
